<compile_context>
chip_gen: v6e
topology: v6e:2x2x1
jax: 0.10.0
libtpu: 0.0.40
codegen_flags: <defaults>
</compile_context>

<pallas_src>
import functools
import math

import jax
import jax.numpy as jnp
from jax.experimental import pallas as pl
from jax.experimental.pallas import tpu as pltpu

_LANE = 128      # lane (last-dim) width of a vreg
_SUBLANE = 8     # sublane (second-to-last dim) width of a f32 vreg


def _round_up(n, m):
    return ((n + m - 1) // m) * m


# --------------------------------------------------------------------------
# Kernel
# --------------------------------------------------------------------------
def _fused_mlp_kernel(*refs, relu_flags):
    """Fused MLP over one batch tile: h_{i+1} = act(h_i @ W_i + b_i), all in VMEM.

    refs layout: (x_ref, w_0..w_{L-1}, b_0..b_{L-1}, o_ref)
      x_ref: (TB, K0_pad)          padded input activations (batch tile)
      w_i  : (K_i_pad, N_i_pad)    pre-transposed, zero-padded, resident weights
      b_i  : (1, N_i_pad)          zero-padded biases
      o_ref: (TB, N_last_pad)      padded output of the last layer
    """
    n_layers = len(relu_flags)
    x_ref = refs[0]
    w_refs = refs[1:1 + n_layers]
    b_refs = refs[1 + n_layers:1 + 2 * n_layers]
    o_ref = refs[1 + 2 * n_layers]

    h = x_ref[...]
    for i, apply_relu in enumerate(relu_flags):   # static unroll over layers
        w = w_refs[i][...]
        # bf16 (or f32) MXU inputs, f32 accumulation.
        y = jnp.dot(h.astype(w.dtype), w, preferred_element_type=jnp.float32)
        y = y + b_refs[i][...]
        if apply_relu:
            y = jnp.maximum(y, 0.0)
        h = y
    o_ref[...] = h.astype(o_ref.dtype)


# --------------------------------------------------------------------------
# Forward wrapper (jitted): pad input -> fused pallas_call -> slice output
# --------------------------------------------------------------------------
@functools.partial(jax.jit, static_argnames=("relu_flags", "out_dim", "batch_tile"))
def ann_forward_packed(x, ws, bs, relu_flags, out_dim, batch_tile=256):
    B, d_in = x.shape
    n_layers = len(ws)
    k0_pad = ws[0].shape[0]
    n_last_pad = ws[-1].shape[1]

    # Batch tile: ~256 rows for f32 (review), multiple of the 8-row sublane.
    tb = min(batch_tile, _round_up(B, _SUBLANE))
    tb = _round_up(tb, _SUBLANE)
    b_pad = _round_up(B, tb)
    num_tiles = b_pad // tb

    # Single pad op (no zeros + dynamic_update_slice round trip).
    x_pad = jnp.pad(x.astype(jnp.float32), ((0, b_pad - B), (0, k0_pad - d_in)))

    # VMEM budget: resident weights/biases + double-buffered x/out tiles
    # + live intermediate activations, with headroom.
    w_bytes = sum(math.prod(w.shape) * jnp.dtype(w.dtype).itemsize for w in ws)
    b_bytes = sum(math.prod(b.shape) * jnp.dtype(b.dtype).itemsize for b in bs)
    max_n_pad = max(w.shape[1] for w in ws)
    io_bytes = 2 * 2 * (tb * k0_pad + tb * n_last_pad) * 4   # double-buffered tiles
    act_bytes = 4 * tb * max_n_pad * 4                       # intermediate activations
    vmem_limit = w_bytes + b_bytes + io_bytes + act_bytes + (4 << 20)
    vmem_limit = int(min(max(vmem_limit, 32 << 20), 96 << 20))

    kernel = functools.partial(_fused_mlp_kernel, relu_flags=relu_flags)
    out_shape = jax.ShapeDtypeStruct((b_pad, n_last_pad), jnp.float32)

    if num_tiles == 1:
        # Tiny batch: single full-VMEM block call (no size-1-grid pipeline overhead).
        out_pad = pl.pallas_call(
            kernel,
            out_shape=out_shape,
            in_specs=[pl.BlockSpec(memory_space=pltpu.MemorySpace.VMEM)]
                     * (1 + 2 * n_layers),
            out_specs=pl.BlockSpec(memory_space=pltpu.MemorySpace.VMEM),
            compiler_params=pltpu.CompilerParams(vmem_limit_bytes=vmem_limit),
        )(x_pad, *ws, *bs)
    else:
        # Batch grid: x/out tiles stream while the per-layer weights stay
        # resident (constant index_map => DMA'd once, not per grid step).
        x_spec = pl.BlockSpec((tb, k0_pad), lambda i: (i, 0))
        w_specs = [pl.BlockSpec(w.shape, lambda i: (0, 0)) for w in ws]
        b_specs = [pl.BlockSpec(b.shape, lambda i: (0, 0)) for b in bs]
        out_spec = pl.BlockSpec((tb, n_last_pad), lambda i: (i, 0))
        out_pad = pl.pallas_call(
            kernel,
            out_shape=out_shape,
            grid=(num_tiles,),
            in_specs=[x_spec, *w_specs, *b_specs],
            out_specs=out_spec,
            compiler_params=pltpu.CompilerParams(
                dimension_semantics=("parallel",),
                vmem_limit_bytes=vmem_limit),
        )(x_pad, *ws, *bs)

    return out_pad[:B, :out_dim]


# --------------------------------------------------------------------------
# Parameter init / packing (done once, reused across forwards)
# --------------------------------------------------------------------------
def init_ann_params(key, input_dim, hidden_layer_sizes, dtype=jnp.float32):
    """Deterministic init mirroring nn.Linear shapes: weight (out,in), bias (out,)."""
    params = []
    last = input_dim
    for dim in hidden_layer_sizes:
        key, kw, kb = jax.random.split(key, 3)
        bound = float(1.0 / (last ** 0.5))
        w = jax.random.uniform(kw, (dim, last), dtype, -bound, bound)  # (out, in)
        b = jax.random.uniform(kb, (dim,), dtype, -bound, bound)
        params.append((w, b))
        last = dim
    return params


def pack_params(params, input_dim, weights_dtype=jnp.float32):
    """Pre-transpose each weight to (in,out) and zero-pad each feature dim to a
    128 multiple, PER LAYER (no global-max padding).

    Zero padding is exact: padded input columns, padded weight rows/cols and
    padded bias entries are zero, and relu(0)=0, so padded lanes stay zero
    through the whole chain.
    """
    dims = [input_dim] + [w.shape[0] for w, _ in params]
    padded = [_round_up(d, _LANE) for d in dims]
    ws, bs = [], []
    for i, (w, b) in enumerate(params):
        d_out, d_in = w.shape
        k_pad, n_pad = padded[i], padded[i + 1]
        w_p = jnp.zeros((k_pad, n_pad), weights_dtype)
        w_p = w_p.at[:d_in, :d_out].set(w.T.astype(weights_dtype))
        b_p = jnp.zeros((1, n_pad), jnp.float32)
        b_p = b_p.at[0, :d_out].set(b.astype(jnp.float32))
        ws.append(w_p)
        bs.append(b_p)
    return tuple(ws), tuple(bs), dims[-1]


def make_relu_flags(n_layers, activation="relu", output_activation="relu"):
    flags = []
    for i in range(1, n_layers + 1):
        act = activation if i != n_layers else output_activation
        if act == "relu":
            flags.append(True)
        elif act in ("identity", "none", "", None):
            flags.append(False)
        else:
            raise ValueError(f"unsupported activation for Pallas ANNModel: {act!r}")
    return tuple(flags)


def make_ann_model(params, input_dim, activation="relu", output_activation="relu",
                   weights_dtype=jnp.float32, batch_tile=256):
    """Pack weights ONCE and return a forward callable (no per-call re-packing)."""
    ws, bs, out_dim = pack_params(params, input_dim, weights_dtype)
    relu_flags = make_relu_flags(len(params), activation, output_activation)

    def forward(x):
        return ann_forward_packed(x, ws, bs, relu_flags, out_dim, batch_tile)

    return forward


# --------------------------------------------------------------------------
# Example / self-check
# --------------------------------------------------------------------------
if __name__ == "__main__":
    key = jax.random.PRNGKey(0)
    k_x, k_x2, k_p = jax.random.split(key, 3)

    batch = 16
    input_dim = 8
    hidden_layer_sizes = (32, 200, 16)   # heterogeneous -> per-layer padding

    x = jax.random.normal(k_x, (batch, input_dim), jnp.float32)
    params = init_ann_params(k_p, input_dim, hidden_layer_sizes, jnp.float32)

    # Reference in plain JAX (same semantics as the PyTorch module defaults:
    # relu between hidden layers AND on the output layer).
    def ref_forward(xin):
        h = xin
        for w, b in params:
            h = jnp.maximum(h @ w.T + b, 0.0)
        return h

    # ---- f32 weights, tiny batch (no-grid path) ----
    fwd_f32 = make_ann_model(params, input_dim, weights_dtype=jnp.float32)
    out = jax.block_until_ready(fwd_f32(x))
    ref = ref_forward(x)
    assert out.shape == (batch, hidden_layer_sizes[-1])
    assert jnp.allclose(out, ref, atol=1e-5, rtol=1e-5)

    # ---- f32 weights, larger batch (batch-grid path, TB=256) ----
    big_batch = 600
    x_big = jax.random.normal(k_x2, (big_batch, input_dim), jnp.float32)
    out_big = jax.block_until_ready(fwd_f32(x_big))
    ref_big = ref_forward(x_big)
    assert out_big.shape == (big_batch, hidden_layer_sizes[-1])
    assert jnp.allclose(out_big, ref_big, atol=1e-5, rtol=1e-5)

    # ---- bf16 weights (MXU-native on v5e/v6e/v7x), f32 accumulation ----
    fwd_bf16 = make_ann_model(params, input_dim, weights_dtype=jnp.bfloat16)
    out_bf16 = jax.block_until_ready(fwd_bf16(x))
    assert jnp.allclose(out_bf16, ref, atol=5e-2, rtol=5e-2)

    print("KERNEL_OK")
</pallas_src>

<mosaic_0001>
module attributes {stable_mosaic.version = 11 : i64} {
  func.func @_fused_mlp_kernel(%arg0: memref<16x128xf32, #tpu.memory_space<vmem>>, %arg1: memref<128x128xf32, #tpu.memory_space<vmem>>, %arg2: memref<128x256xf32, #tpu.memory_space<vmem>>, %arg3: memref<256x128xf32, #tpu.memory_space<vmem>>, %arg4: memref<1x128xf32, #tpu.memory_space<vmem>>, %arg5: memref<1x256xf32, #tpu.memory_space<vmem>>, %arg6: memref<1x128xf32, #tpu.memory_space<vmem>>, %arg7: memref<16x128xf32, #tpu.memory_space<vmem>>) attributes {dimension_semantics = [], scalar_prefetch = 0 : i64, scratch_operands = 0 : i64, tpu.core_type = #tpu.core_type<tc>} {
    %c0 = arith.constant 0 : index
    %c0_0 = arith.constant 0 : index
    %0 = vector.load %arg0[%c0, %c0_0] : memref<16x128xf32, #tpu.memory_space<vmem>>, vector<16x128xf32>
    %c0_1 = arith.constant 0 : index
    %c0_2 = arith.constant 0 : index
    %1 = vector.load %arg1[%c0_1, %c0_2] : memref<128x128xf32, #tpu.memory_space<vmem>>, vector<128x128xf32>
    %cst = arith.constant dense<0.000000e+00> : vector<16x128xf32>
    %2 = tpu.matmul %0, %1, %cst {dimension_numbers = #tpu.dot_dimension_numbers<[1], [0], [0], [1], [0, 0, 1, 1], [], []>} : vector<16x128xf32>, vector<128x128xf32>, vector<16x128xf32> -> vector<16x128xf32>
    %c0_3 = arith.constant 0 : index
    %c0_4 = arith.constant 0 : index
    %3 = vector.load %arg4[%c0_3, %c0_4] : memref<1x128xf32, #tpu.memory_space<vmem>>, vector<1x128xf32>
    %4 = vector.broadcast %3 : vector<1x128xf32> to vector<16x128xf32>
    %5 = arith.addf %2, %4 : vector<16x128xf32>
    %cst_5 = arith.constant 0.000000e+00 : f32
    %6 = vector.broadcast %cst_5 : f32 to vector<16x128xf32>
    %7 = arith.maximumf %5, %6 : vector<16x128xf32>
    %c0_6 = arith.constant 0 : index
    %c0_7 = arith.constant 0 : index
    %8 = vector.load %arg2[%c0_6, %c0_7] : memref<128x256xf32, #tpu.memory_space<vmem>>, vector<128x256xf32>
    %cst_8 = arith.constant dense<0.000000e+00> : vector<16x256xf32>
    %9 = tpu.matmul %7, %8, %cst_8 {dimension_numbers = #tpu.dot_dimension_numbers<[1], [0], [0], [1], [0, 0, 1, 1], [], []>} : vector<16x128xf32>, vector<128x256xf32>, vector<16x256xf32> -> vector<16x256xf32>
    %c0_9 = arith.constant 0 : index
    %c0_10 = arith.constant 0 : index
    %10 = vector.load %arg5[%c0_9, %c0_10] : memref<1x256xf32, #tpu.memory_space<vmem>>, vector<1x256xf32>
    %11 = vector.broadcast %10 : vector<1x256xf32> to vector<16x256xf32>
    %12 = arith.addf %9, %11 : vector<16x256xf32>
    %cst_11 = arith.constant 0.000000e+00 : f32
    %13 = vector.broadcast %cst_11 : f32 to vector<16x256xf32>
    %14 = arith.maximumf %12, %13 : vector<16x256xf32>
    %c0_12 = arith.constant 0 : index
    %c0_13 = arith.constant 0 : index
    %15 = vector.load %arg3[%c0_12, %c0_13] : memref<256x128xf32, #tpu.memory_space<vmem>>, vector<256x128xf32>
    %cst_14 = arith.constant dense<0.000000e+00> : vector<16x128xf32>
    %16 = tpu.matmul %14, %15, %cst_14 {dimension_numbers = #tpu.dot_dimension_numbers<[1], [0], [0], [1], [0, 0, 1, 1], [], []>} : vector<16x256xf32>, vector<256x128xf32>, vector<16x128xf32> -> vector<16x128xf32>
    %c0_15 = arith.constant 0 : index
    %c0_16 = arith.constant 0 : index
    %17 = vector.load %arg6[%c0_15, %c0_16] : memref<1x128xf32, #tpu.memory_space<vmem>>, vector<1x128xf32>
    %18 = vector.broadcast %17 : vector<1x128xf32> to vector<16x128xf32>
    %19 = arith.addf %16, %18 : vector<16x128xf32>
    %cst_17 = arith.constant 0.000000e+00 : f32
    %20 = vector.broadcast %cst_17 : f32 to vector<16x128xf32>
    %21 = arith.maximumf %19, %20 : vector<16x128xf32>
    %c0_18 = arith.constant 0 : index
    %c0_19 = arith.constant 0 : index
    %22 = vector.load %arg7[%c0_18, %c0_19] : memref<16x128xf32, #tpu.memory_space<vmem>>, vector<16x128xf32>
    tpu.vector_store %arg7[%c0_18, %c0_19], %21 {strides = array<i32>} : memref<16x128xf32, #tpu.memory_space<vmem>>, vector<16x128xf32>,
    return
  }
}

</mosaic_0001>

<bundles_post_ra>
// kernel: ann_forward_packed.1
= control target key start
LH: loop header
LB: loop body
LE: loop exit
PB: predicated region body
PF: predicated region fallthrough
CT: control target
= control target key end

     0   :  { %12 = vsyncpa [#allocation3], 0  ;;  %s736_s0 = inlined_call_operand.vmem [shape: f32[16,128], index: 0, kind: input, shape index: {}]   ;;  %s737_s1 = inlined_call_operand.hbm [shape: f32[128,128], index: 1, kind: input, shape index: {}]   ;;  %s738_s2 = inlined_call_operand.hbm [shape: f32[128,256], index: 2, kind: input, shape index: {}]   ;;  %s739_s3 = inlined_call_operand.hbm [shape: f32[256,128], index: 3, kind: input, shape index: {}]   ;;  %s740_s4 = inlined_call_operand.vmem [shape: f32[1,128], index: 4, kind: input, shape index: {}]   ;;  %s741_s5 = inlined_call_operand.vmem [shape: f32[1,256], index: 5, kind: input, shape index: {}]   ;;  %s742_s6 = inlined_call_operand.vmem [shape: f32[1,128], index: 6, kind: input, shape index: {}]   ;;  %s743_s7 = inlined_call_operand.hbm [shape: f32[16,128], index: 7, kind: output, shape index: {}]  }
   0x1   :  { %13 = vsyncpa [#allocation6], 0 }
   0x2   :  { %14 = vsyncpa [#allocation4], 0  ;;  %s651_s24 = smov [#allocation5]  }
   0x3   :  { %s34_s25 = sshll.u32 %s651_s24, 4  ;;  %s35_s25 = int_to_ptr.vmem [resolvable:$true] %s34_s25 }
   0x4   :  { %s573_s26 = scalar_lea.vmem %s35_s25, 4096  ;;  %p578_p1 = scmp.lt.s32.totalorder %s35_s25, %s35_s25 }
   0x5   :  { %p574_p0 = scmp.ne.s32.totalorder %s35_s25, %s573_s26  ;;  %p579_p2 = scmp.lt.s32.totalorder %s573_s26, %s573_s26 }
   0x7   :  { %p580_p3 = por %p579_p2, %p578_p1 }
   0x9   :  { %p581_p4 = pnand %p580_p3, %p574_p0 }
   0xb   :  { %584 = shalt.err (!%p581_p4)
}
   0xc   :  { %s652_s27 = smov 256   ;;  %s653_s28 = smov 16  }
   0xd   :  { %40 = dma.hbm_to_vmem [thread:$0]  %s738_s2, 4096, %s35_s25, [#allocation6], %s652_s27, %s652_s27, %s653_s28  }
   0xe   :  { %s654_s8 = smov [#allocation2]  }
   0xf   :  { %s22_s9 = sshll.u32 %s654_s8, 4  ;;  %s23_s9 = int_to_ptr.vmem [resolvable:$true] %s22_s9 }
  0x10   :  { %s593_s10 = scalar_lea.vmem %s23_s9, 2048  ;;  %p598_p6 = scmp.lt.s32.totalorder %s23_s9, %s23_s9 }
  0x11   :  { %p594_p5 = scmp.ne.s32.totalorder %s23_s9, %s593_s10  ;;  %p599_p7 = scmp.lt.s32.totalorder %s593_s10, %s593_s10 }
  0x13   :  { %p600_p8 = por %p599_p7, %p598_p6 }
  0x15   :  { %p601_p9 = pnand %p600_p8, %p594_p5 }
  0x17   :  { %604 = shalt.err (!%p601_p9)
}
  0x18   :  { %s655_s11 = smov 128   ;;  %s656_s12 = smov 8  }
  0x19   :  { %28 = dma.hbm_to_vmem [thread:$0]  %s737_s1, 2048, %s23_s9, [#allocation3], %s655_s11, %s655_s11, %s656_s12  }
  0x1a   :  { %s657_s2 = smov [#allocation7]  }
  0x1b   :  { %s46_s15 = sshll.u32 %s657_s2, 4  ;;  %s47_s15 = int_to_ptr.vmem [resolvable:$true] %s46_s15 }
  0x1c   :  { %s613_s16 = scalar_lea.vmem %s47_s15, 4096  ;;  %p618_p11 = scmp.lt.s32.totalorder %s47_s15, %s47_s15 }
  0x1d   :  { %p614_p10 = scmp.ne.s32.totalorder %s47_s15, %s613_s16  ;;  %p619_p12 = scmp.lt.s32.totalorder %s613_s16, %s613_s16 }
  0x1f   :  { %p620_p13 = por %p619_p12, %p618_p11 }
  0x21   :  { %p621_p0 = pnand %p620_p13, %p614_p10 }
  0x23   :  { %624 = shalt.err (!%p621_p0)
}
  0x24   :  { %52 = dma.hbm_to_vmem [thread:$0]  %s739_s3, 4096, %s47_s15, [#allocation6], %s655_s11, %s655_s11, %s656_s12  }
  0x25   :  { %645 = dma.done.wait [#allocation3], 2048  }
  0x26   :  { %646 = vsyncadd [#allocation3], 4294965248 }
  0x27   :  { %647 = dma.done.wait [#allocation6], 8192  }
  0x28   :  { %648 = vsyncadd [#allocation6], 4294959104  ;;  %v85_v0 = vld [vmem:[#allocation2 + $0x78] sm:$0xff]  ;;  %v84_v1 = vld [vmem:[#allocation2 + $0x70] sm:$0xff]  ;;  %v658_v50 = vmov 0.0   ;;  %s659_s24 = smov [#allocation8]  }
  0x29   :  { %489 = vmatprep.subr.mxu0 %v85_v0  ;;  %v83_v2 = vld [vmem:[#allocation2 + $0x68] sm:$0xff]  ;;  %v82_v3 = vld [vmem:[#allocation2 + $0x60] sm:$0xff]  ;;  %v81_v4 = vld [vmem:[#allocation2 + $0x58] sm:$0xff]  ;;  %278 = vmatprep.mubr.f32.mxu1 %v658_v50  ;;  %s418_s25 = sshll.u32 %s659_s24, 4  ;;  %s419_s25 = int_to_ptr.vmem [resolvable:$true] %s418_s25 }
  0x2a   :  { %490 = vmatpush3.msra.mxu0 %v85_v0  ;;  %v68_v5 = vld [vmem:[%s736_s0] sm:$0xff]  ;;  %v201_v6 = vld [vmem:[#allocation5 + $0xf8] sm:$0xff]  ;;  %v200_v7 = vld [vmem:[#allocation5 + $0xf0] sm:$0xff]  ;;  %s625_s26 = scalar_lea.vmem %s419_s25, 256  ;;  %p630_p2 = scmp.lt.s32.totalorder %s419_s25, %s419_s25 }
  0x2b   :  { %491 = vmatprep.subr.mxu0 %v84_v1  ;;  %521 = vmatprep.mubr.f32.mxu0 %v68_v5  ;;  %v199_v8 = vld [vmem:[#allocation5 + $0xe8] sm:$0xff]  ;;  %v198_v9 = vld [vmem:[#allocation5 + $0xe0] sm:$0xff]  ;;  %v80_v10 = vld [vmem:[#allocation2 + $0x50] sm:$0xff]  ;;  %p626_p1 = scmp.ne.s32.totalorder %s419_s25, %s625_s26  ;;  %p631_p3 = scmp.lt.s32.totalorder %s625_s26, %s625_s26 }
  0x2c   :  { %492 = vmatpush3.msra.mxu0 %v84_v1  ;;  %214 = vmatprep.subr.mxu1 %v201_v6  ;;  %v197_v11 = vld [vmem:[#allocation5 + $0xd8] sm:$0xff]  ;;  %v196_v12 = vld [vmem:[#allocation5 + $0xd0] sm:$0xff]  ;;  %v79_v13 = vld [vmem:[#allocation2 + $0x48] sm:$0xff] }
  0x2d   :  { %493 = vmatprep.subr.mxu0 %v83_v2  ;;  %215 = vmatpush1.msra.mxu1 %v200_v7  ;;  %v195_v14 = vld [vmem:[#allocation5 + $0xc8] sm:$0xff]  ;;  %v194_v15 = vld [vmem:[#allocation5 + $0xc0] sm:$0xff]  ;;  %v193_v17 = vld [vmem:[#allocation5 + $0xb8] sm:$0xff]  ;;  %p632_p4 = por %p631_p3, %p630_p2 }
  0x2e   :  { %494 = vmatpush3.msra.mxu0 %v83_v2  ;;  %216 = vmatprep.subr.mxu1 %v199_v8  ;;  %v78_v16 = vld [vmem:[#allocation2 + $0x40] sm:$0xff]  ;;  %v192_v18 = vld [vmem:[#allocation5 + $0xb0] sm:$0xff]  ;;  %v77_v19 = vld [vmem:[#allocation2 + $0x38] sm:$0xff] }
  0x2f   :  { %495 = vmatprep.subr.mxu0 %v82_v3  ;;  %217 = vmatpush1.msra.mxu1 %v198_v9  ;;  %v191_v20 = vld [vmem:[#allocation5 + $0xa8] sm:$0xff]  ;;  %v190_v21 = vld [vmem:[#allocation5 + $0xa0] sm:$0xff]  ;;  %v76_v22 = vld [vmem:[#allocation2 + $0x30] sm:$0xff]  ;;  %p633_p5 = pnand %p632_p4, %p626_p1 }
  0x30   :  { %496 = vmatpush3.msra.mxu0 %v82_v3  ;;  %218 = vmatprep.subr.mxu1 %v197_v11  ;;  %v189_v23 = vld [vmem:[#allocation5 + $0x98] sm:$0xff]  ;;  %v188_v24 = vld [vmem:[#allocation5 + $0x90] sm:$0xff]  ;;  %v75_v25 = vld [vmem:[#allocation2 + $0x28] sm:$0xff] }
  0x31   :  { %497 = vmatprep.subr.mxu0 %v81_v4  ;;  %219 = vmatpush1.msra.mxu1 %v196_v12  ;;  %v187_v26 = vld [vmem:[#allocation5 + $0x88] sm:$0xff]  ;;  %v186_v27 = vld [vmem:[#allocation5 + $0x80] sm:$0xff]  ;;  %v185_v29 = vld [vmem:[#allocation5 + $0x78] sm:$0xff] }
  0x32   :  { %498 = vmatpush3.msra.mxu0 %v81_v4  ;;  %220 = vmatprep.subr.mxu1 %v195_v14  ;;  %v74_v28 = vld [vmem:[#allocation2 + $0x20] sm:$0xff]  ;;  %v184_v30 = vld [vmem:[#allocation5 + $0x70] sm:$0xff]  ;;  %v73_v31 = vld [vmem:[#allocation2 + $0x18] sm:$0xff] }
  0x33   :  { %499 = vmatprep.subr.mxu0 %v80_v10  ;;  %221 = vmatpush1.msra.mxu1 %v194_v15  ;;  %v183_v32 = vld [vmem:[#allocation5 + $0x68] sm:$0xff]  ;;  %v182_v33 = vld [vmem:[#allocation5 + $0x60] sm:$0xff]  ;;  %v72_v34 = vld [vmem:[#allocation2 + $0x10] sm:$0xff] }
  0x34   :  { %500 = vmatpush3.msra.mxu0 %v80_v10  ;;  %222 = vmatprep.subr.mxu1 %v193_v17  ;;  %v181_v35 = vld [vmem:[#allocation5 + $0x58] sm:$0xff]  ;;  %v180_v36 = vld [vmem:[#allocation5 + $0x50] sm:$0xff]  ;;  %v71_v37 = vld [vmem:[#allocation2 + $0x8] sm:$0xff] }
  0x35   :  { %501 = vmatprep.subr.mxu0 %v79_v13  ;;  %223 = vmatpush1.msra.mxu1 %v192_v18  ;;  %v179_v38 = vld [vmem:[#allocation5 + $0x48] sm:$0xff]  ;;  %v178_v39 = vld [vmem:[#allocation5 + $0x40] sm:$0xff]  ;;  %v177_v41 = vld [vmem:[#allocation5 + $0x38] sm:$0xff] }
  0x36   :  { %502 = vmatpush3.msra.mxu0 %v79_v13  ;;  %224 = vmatprep.subr.mxu1 %v191_v20  ;;  %v70_v40 = vld [vmem:[#allocation2] sm:$0xff]  ;;  %v69_v42 = vld [vmem:[%s736_s0 + $0x8] sm:$0xff]  ;;  %v176_v43 = vld [vmem:[#allocation5 + $0x30] sm:$0xff] }
  0x37   :  { %503 = vmatprep.subr.mxu0 %v78_v16  ;;  %225 = vmatpush1.msra.mxu1 %v190_v21  ;;  %v175_v44 = vld [vmem:[#allocation5 + $0x28] sm:$0xff]  ;;  %v174_v45 = vld [vmem:[#allocation5 + $0x20] sm:$0xff]  ;;  %v173_v46 = vld [vmem:[#allocation5 + $0x18] sm:$0xff] }
  0x38   :  { %504 = vmatpush3.msra.mxu0 %v78_v16  ;;  %226 = vmatprep.subr.mxu1 %v189_v23  ;;  %v172_v47 = vld [vmem:[#allocation5 + $0x10] sm:$0xff]  ;;  %v171_v48 = vld [vmem:[#allocation5 + $0x8] sm:$0xff]  ;;  %v170_v49 = vld [vmem:[#allocation5] sm:$0xff] }
  0x39   :  { %505 = vmatprep.subr.mxu0 %v77_v19  ;;  %227 = vmatpush1.msra.mxu1 %v188_v24  ;;  %v326_v51 = vld [vmem:[#allocation7 + $0xf8] sm:$0xff]  ;;  %v325_v53 = vld [vmem:[#allocation7 + $0xf0] sm:$0xff]  ;;  %v324_v55 = vld [vmem:[#allocation7 + $0xe8] sm:$0xff] }
  0x3a   :  { %506 = vmatpush3.msra.mxu0 %v77_v19  ;;  %228 = vmatprep.subr.mxu1 %v187_v26  ;;  %v310_v52 = vld [vmem:[#allocation7 + $0x78] sm:$0xff]  ;;  %v309_v54 = vld [vmem:[#allocation7 + $0x70] sm:$0xff]  ;;  %v308_v56 = vld [vmem:[#allocation7 + $0x68] sm:$0xff]  ;;  %v204_v26 = vlaneseq }
  0x3b   :  { %507 = vmatprep.subr.mxu0 %v76_v22  ;;  %229 = vmatpush1.msra.mxu1 %v186_v27  ;;  %v323_v57 = vld [vmem:[#allocation7 + $0xe0] sm:$0xff]  ;;  %v322_v59 = vld [vmem:[#allocation7 + $0xd8] sm:$0xff]  ;;  %v321_v61 = vld [vmem:[#allocation7 + $0xd0] sm:$0xff] }
  0x3c   :  { %508 = vmatpush3.msra.mxu0 %v76_v22  ;;  %230 = vmatprep.subr.mxu1 %v185_v29  ;;  %v307_v58 = vld [vmem:[#allocation7 + $0x60] sm:$0xff]  ;;  %v306_v60 = vld [vmem:[#allocation7 + $0x58] sm:$0xff]  ;;  %v305_v62 = vld [vmem:[#allocation7 + $0x50] sm:$0xff]  ;;  %v205_v27 = vshrl.u32 %v204_v26, 7 }
  0x3d   :  { %509 = vmatprep.subr.mxu0 %v75_v25  ;;  %231 = vmatpush1.msra.mxu1 %v184_v30  ;;  %v320_v63 = vld [vmem:[#allocation7 + $0xc8] sm:$0xff]  ;;  %v319_v1 = vld [vmem:[#allocation7 + $0xc0] sm:$0xff]  ;;  %v318_v3 = vld [vmem:[#allocation7 + $0xb8] sm:$0xff] }
  0x3e   :  { %510 = vmatpush3.msra.mxu0 %v75_v25  ;;  %232 = vmatprep.subr.mxu1 %v183_v32  ;;  %v304_v0 = vld [vmem:[#allocation7 + $0x48] sm:$0xff]  ;;  %v303_v2 = vld [vmem:[#allocation7 + $0x40] sm:$0xff]  ;;  %v302_v4 = vld [vmem:[#allocation7 + $0x38] sm:$0xff]  ;;  %v210_v30 = vsub.s32 1, %v205_v27 }
  0x3f   :  { %511 = vmatprep.subr.mxu0 %v74_v28  ;;  %233 = vmatpush1.msra.mxu1 %v182_v33  ;;  %v317_v5 = vld [vmem:[#allocation7 + $0xb0] sm:$0xff]  ;;  %v316_v7 = vld [vmem:[#allocation7 + $0xa8] sm:$0xff]  ;;  %v315_v9 = vld [vmem:[#allocation7 + $0xa0] sm:$0xff] }
  0x40   :  { %512 = vmatpush3.msra.mxu0 %v74_v28  ;;  %234 = vmatprep.subr.mxu1 %v181_v35  ;;  %v301_v6 = vld [vmem:[#allocation7 + $0x30] sm:$0xff]  ;;  %v300_v8 = vld [vmem:[#allocation7 + $0x28] sm:$0xff]  ;;  %v299_v10 = vld [vmem:[#allocation7 + $0x20] sm:$0xff]  ;;  %v206_v28 = vsub.s32 0, %v205_v27 }
  0x41   :  { %513 = vmatprep.subr.mxu0 %v73_v31  ;;  %235 = vmatpush1.msra.mxu1 %v180_v36  ;;  %v431_v12 = vld [vmem:[%s740_s4] ss:$0 sm:$0xff]  ;;  %v314_v18 = vld [vmem:[#allocation7 + $0x98] sm:$0xff]  ;;  %v313_v20 = vld [vmem:[#allocation7 + $0x90] sm:$0xff] }
  0x42   :  { %514 = vmatpush3.msra.mxu0 %v73_v31  ;;  %236 = vmatprep.subr.mxu1 %v179_v38  ;;  %v298_v19 = vld [vmem:[#allocation7 + $0x18] sm:$0xff]  ;;  %v297_v21 = vld [vmem:[#allocation7 + $0x10] sm:$0xff]  ;;  %v312_v22 = vld [vmem:[#allocation7 + $0x88] sm:$0xff] }
  0x43   :  { %515 = vmatprep.subr.mxu0 %v72_v34  ;;  %237 = vmatpush1.msra.mxu1 %v178_v39  ;;  %v296_v23 = vld [vmem:[#allocation7 + $0x8] sm:$0xff]  ;;  %v311_v24 = vld [vmem:[#allocation7 + $0x80] sm:$0xff] }
  0x44   :  { %516 = vmatpush3.msra.mxu0 %v72_v34  ;;  %238 = vmatprep.subr.mxu1 %v177_v41  ;;  %v295_v25 = vld [vmem:[#allocation7] sm:$0xff] }
  0x45   :  { %517 = vmatprep.subr.mxu0 %v71_v37  ;;  %239 = vmatpush1.msra.mxu1 %v176_v43  ;;  %v202_v29 = vld [vmem:[%s741_s5] sm:$0x3] }
  0x46   :  { %518 = vmatpush3.msra.mxu0 %v71_v37  ;;  %240 = vmatprep.subr.mxu1 %v175_v44  ;;  %v207_v31 = vrot.slane %v202_v29, %v206_v28  ;;  %v211_v32 = vrot.slane %v202_v29, %v210_v30 }
  0x47   :  { %519 = vmatprep.subr.mxu0 %v70_v40  ;;  %241 = vmatpush1.msra.mxu1 %v174_v45 }
  0x48   :  { %520 = vmatpush3.msra.mxu0 %v70_v40  ;;  %242 = vmatprep.subr.mxu1 %v173_v46  ;;  %v432_v46 = vld [vmem:[%s742_s6] ss:$0 sm:$0xff] }
  0x49   :  { %522 = vmatmul.mubr.f32.vlgmr.msra.gmra.mxu0 %v69_v42  ;;  %243 = vmatpush1.msra.mxu1 %v172_v47 }
  0x4a   :  { %244 = vmatprep.subr.mxu1 %v171_v48  ;;  %451 = vmatprep.subr.mxu0 %v326_v51 }
  0x4b   :  { %245 = vmatpush1.msra.mxu1 %v170_v49  ;;  %452 = vmatpush3.msra.mxu0 %v310_v52 }
  0x4c   :  { %524 = vmatprep.subr.mxu1 %v326_v51  ;;  %453 = vmatprep.subr.mxu0 %v325_v53 }
  0x4d   :  { %454 = vmatpush3.msra.mxu0 %v309_v54 }
  0x4e   :  { %455 = vmatprep.subr.mxu0 %v324_v55 }
  0x4f   :  { %456 = vmatpush3.msra.mxu0 %v308_v56 }
  0x50   :  { %457 = vmatprep.subr.mxu0 %v323_v57 }
  0x51   :  { %458 = vmatpush3.msra.mxu0 %v307_v58 }
  0x52   :  { %459 = vmatprep.subr.mxu0 %v322_v59 }
  0x53   :  { %460 = vmatpush3.msra.mxu0 %v306_v60 }
  0x54   :  { %461 = vmatprep.subr.mxu0 %v321_v61 }
  0x55   :  { %462 = vmatpush3.msra.mxu0 %v305_v62 }
  0x56   :  { %463 = vmatprep.subr.mxu0 %v320_v63 }
  0x57   :  { %464 = vmatpush3.msra.mxu0 %v304_v0 }
  0x58   :  { %465 = vmatprep.subr.mxu0 %v319_v1 }
  0x59   :  { %466 = vmatpush3.msra.mxu0 %v303_v2 }
  0x5a   :  { %467 = vmatprep.subr.mxu0 %v318_v3 }
  0x5b   :  { %468 = vmatpush3.msra.mxu0 %v302_v4 }
  0x5c   :  { %469 = vmatprep.subr.mxu0 %v317_v5 }
  0x5d   :  { %470 = vmatpush3.msra.mxu0 %v301_v6 }
  0x5e   :  { %471 = vmatprep.subr.mxu0 %v316_v7 }
  0x5f   :  { %472 = vmatpush3.msra.mxu0 %v300_v8 }
  0x60   :  { %473 = vmatprep.subr.mxu0 %v315_v9 }
  0x61   :  { %474 = vmatpush3.msra.mxu0 %v299_v10 }
  0x62   :  { %475 = vmatprep.subr.mxu0 %v314_v18 }
  0x63   :  { %476 = vmatpush3.msra.mxu0 %v298_v19 }
  0x64   :  { %477 = vmatprep.subr.mxu0 %v313_v20 }
  0x65   :  { %478 = vmatpush3.msra.mxu0 %v297_v21 }
  0x66   :  { %479 = vmatprep.subr.mxu0 %v312_v22 }
  0x67   :  { %480 = vmatpush3.msra.mxu0 %v296_v23 }
  0x68   :  { %481 = vmatprep.subr.mxu0 %v311_v24 }
  0x69   :  { %482 = vmatpush3.msra.mxu0 %v295_v25 }
 0x109   :  { %v523_v11 = vpop.f32.mrf.mxu0 }
 0x10a   :  { %v165_v15 = vadd.f32 %v523_v11, %v431_v12 }
 0x10b   :  { %v159_v13 = vpop.f32.mrf.mxu0 }
 0x10c   :  { %v160_v14 = vadd.f32 %v431_v12, %v159_v13  ;;  %v169_v17 = vmax.f32 %v165_v15, 0.0 }
 0x10e   :  { %v168_v16 = vmax.f32 %v160_v14, 0.0 }
 0x110   :  { %279 = vmatmul.mubr.f32.vlgmr.msra.gmra.mxu1 %v168_v16 }
 0x111   :  { %284 = vmatprep.mubr.f32.mxu1 %v658_v50  ;;  %540 = vmatpush3.msra.mxu1 %v310_v52 }
 0x112   :  { %525 = vmatprep.subr.mxu1 %v325_v53 }
 0x113   :  { %541 = vmatpush3.msra.mxu1 %v309_v54 }
 0x114   :  { %285 = vmatmul.mubr.f32.gmra.mxu1 %v169_v17  ;;  %526 = vmatprep.subr.mxu1 %v324_v55 }
 0x115   :  { %542 = vmatpush3.msra.mxu1 %v308_v56 }
 0x116   :  { %527 = vmatprep.subr.mxu1 %v323_v57 }
 0x117   :  { %543 = vmatpush3.msra.mxu1 %v307_v58 }
 0x118   :  { %528 = vmatprep.subr.mxu1 %v322_v59 }
 0x119   :  { %544 = vmatpush3.msra.mxu1 %v306_v60 }
 0x11a   :  { %529 = vmatprep.subr.mxu1 %v321_v61 }
 0x11b   :  { %545 = vmatpush3.msra.mxu1 %v305_v62 }
 0x11c   :  { %530 = vmatprep.subr.mxu1 %v320_v63 }
 0x11d   :  { %546 = vmatpush3.msra.mxu1 %v304_v0 }
 0x11e   :  { %531 = vmatprep.subr.mxu1 %v319_v1 }
 0x11f   :  { %547 = vmatpush3.msra.mxu1 %v303_v2 }
 0x120   :  { %532 = vmatprep.subr.mxu1 %v318_v3 }
 0x121   :  { %548 = vmatpush3.msra.mxu1 %v302_v4 }
 0x122   :  { %533 = vmatprep.subr.mxu1 %v317_v5 }
 0x123   :  { %549 = vmatpush3.msra.mxu1 %v301_v6 }
 0x124   :  { %534 = vmatprep.subr.mxu1 %v316_v7 }
 0x125   :  { %550 = vmatpush3.msra.mxu1 %v300_v8 }
 0x126   :  { %535 = vmatprep.subr.mxu1 %v315_v9 }
 0x127   :  { %551 = vmatpush3.msra.mxu1 %v299_v10 }
 0x128   :  { %536 = vmatprep.subr.mxu1 %v314_v18 }
 0x129   :  { %552 = vmatpush3.msra.mxu1 %v298_v19 }
 0x12a   :  { %537 = vmatprep.subr.mxu1 %v313_v20 }
 0x12b   :  { %553 = vmatpush3.msra.mxu1 %v297_v21 }
 0x12c   :  { %538 = vmatprep.subr.mxu1 %v312_v22 }
 0x12d   :  { %554 = vmatpush3.msra.mxu1 %v296_v23 }
 0x12e   :  { %539 = vmatprep.subr.mxu1 %v311_v24 }
 0x12f   :  { %555 = vmatpush3.msra.mxu1 %v295_v25 }
 0x1d0   :  { %v280_v33 = vpop.f32.mrf.mxu1 }
 0x1d1   :  { %v281_v34 = vadd.f32 %v280_v33, %v207_v31 }
 0x1d2   :  { %v282_v35 = vpop.f32.mrf.mxu1 }
 0x1d3   :  { %v283_v36 = vadd.f32 %v282_v35, %v211_v32  ;;  %v291_v39 = vmax.f32 %v281_v34, 0.0 }
 0x1d4   :  { %v286_v37 = vpop.f32.mrf.mxu1 }
 0x1d5   :  { %v292_v38 = vmax.f32 %v283_v36, 0.0  ;;  %v287_v40 = vadd.f32 %v286_v37, %v207_v31 }
 0x1d6   :  { %v288_v41 = vpop.f32.mrf.mxu1 }
 0x1d7   :  { %v289_v42 = vadd.f32 %v288_v41, %v211_v32  ;;  %398 = vmatprep.mubr.f32.mxu0 %v292_v38  ;;  %v293_v44 = vmax.f32 %v287_v40, 0.0 }
 0x1d8   :  { %399 = vmatmul.mubr.f32.vlgmr.msra.gmra.mxu0 %v291_v39 }
 0x1d9   :  { %v294_v43 = vmax.f32 %v289_v42, 0.0 }
 0x1db   :  { %403 = vmatprep.mubr.f32.mxu1 %v294_v43 }
 0x1dc   :  { %404 = vmatmul.mubr.f32.vlgmr.msra.gmra.mxu1 %v293_v44 }
 0x298   :  { %v483_v45 = vpop.f32.mrf.mxu0 }
 0x29a   :  { %v484_v47 = vpop.f32.mrf.mxu0 }
 0x29b   :  { %v485_v48 = vadd.f32 %v484_v47, %v483_v45 }
 0x29c   :  { %v486_v49 = vpop.f32.mrf.mxu1 }
 0x29d   :  { %v401_v50 = vadd.f32 %v485_v48, %v432_v46 }
 0x29e   :  { %v487_v51 = vpop.f32.mrf.mxu1 }
 0x29f   :  { %v409_v52 = vmax.f32 %v401_v50, 0.0  ;;  %v488_v53 = vadd.f32 %v487_v51, %v486_v49 }
 0x2a1   :  { %411 = vst [vmem:[#allocation8] sm:$0xff] %v409_v52  ;;  %v406_v54 = vadd.f32 %v488_v53, %v432_v46 }
 0x2a3   :  { %v410_v55 = vmax.f32 %v406_v54, 0.0 }
 0x2a5   :  { %412 = vst [vmem:[#allocation8 + $0x8] sm:$0xff] %v410_v55 }
 0x2a6   :  { %636 = shalt.err (!%p633_p5)
}
 0x2a7   :  { %424 = dma.vmem_to_hbm [thread:$0]  %s419_s25, 256, %s743_s7, [#allocation4], %s655_s11, %s655_s11, %s656_s12  }
 0x2a8   :  { %649 = dma.done.wait [#allocation4], 256  }
 0x2a9   :  { %650 = vsyncadd [#allocation4], 4294967040 }
 0x2aa   :  { %428 = vsyncpa [#allocation3], 1 }
 0x2ab   :  { %429 = vsyncpa [#allocation6], 1 }
 0x2ac   :  { %430 = vsyncpa [#allocation4], 1 }

</bundles_post_ra>
